<compile_context>
chip_gen: v5e
topology: v5e:2x2
jax: 0.10.0
libtpu: 0.0.40
codegen_flags: <defaults>
</compile_context>

<pallas_src>
import functools

import jax
import jax.numpy as jnp
from jax.experimental import pallas as pl
from jax.experimental.pallas import tpu as pltpu

LANES = 128
SUBLANES = 8
STREAM_BLOCK_ROWS = 512                         # ~85% HBM roofline; 2 MiB/step of input DMA
RESIDENT_INPUT_VMEM_BUDGET = 8 * 1024 * 1024    # 2 tensors x 2 pipeline buffers


def _round_up(x, m):
    return ((x + m - 1) // m) * m


def _fused_atfl_kernel(pred_ref, true_ref, out_ref, pt_acc, loss_acc, gamma_ref,
                       *, tiles, block_rows, total, needs_mask, resident):
    phase = pl.program_id(0)
    t = pl.program_id(1)
    inv_total = 1.0 / float(total)

    if resident:
        # whole (padded) tensor is resident in VMEM; slice the current tile
        start = pl.multiple_of(t * block_rows, block_rows)
        x = pred_ref[pl.ds(start, block_rows), :].astype(jnp.float32)
        y = true_ref[pl.ds(start, block_rows), :].astype(jnp.float32)
    else:
        x = pred_ref[...].astype(jnp.float32)
        y = true_ref[...].astype(jnp.float32)

    # one exp shared between the stable BCE log1p term and the sigmoid
    e = jnp.exp(-jnp.abs(x))
    inv = 1.0 / (1.0 + e)
    p = jnp.where(x >= 0.0, inv, e * inv)          # sigmoid(x), stable
    p_t = y * p + (1.0 - y) * (1.0 - p)

    if needs_mask:
        # padded elements must contribute exactly 0 to both sums
        row = jax.lax.broadcasted_iota(jnp.int32, (block_rows, LANES), 0) + t * block_rows
        lane = jax.lax.broadcasted_iota(jnp.int32, (block_rows, LANES), 1)
        valid = (row * LANES + lane) < total        # assumes padded size < 2**31 elements
    else:
        valid = None

    @pl.when(phase == 0)
    def _pt_phase():
        @pl.when(t == 0)
        def _():
            pt_acc[...] = jnp.zeros_like(pt_acc)

        contrib = p_t if valid is None else jnp.where(valid, p_t, 0.0)
        # vreg-shaped partial accumulation: pure VALU adds, no per-step scalar reduce
        pt_acc[...] += contrib.reshape(-1, SUBLANES, LANES).sum(axis=0)

        @pl.when(t == tiles - 1)
        def _():
            s = jnp.sum(pt_acc[...], axis=0, keepdims=True)      # (1, 128)
            s = jnp.sum(s, axis=1, keepdims=True)                # (1, 1)
            mean_pt = s * inv_total
            p_t_old = mean_pt                                    # p_t_list = [mean_pt]
            p_t_new = 0.05 * p_t_old + 0.95 * mean_pt
            gamma_ref[...] = jnp.broadcast_to(-jnp.log(p_t_new), (1, LANES))

    @pl.when(phase == 1)
    def _loss_phase():
        @pl.when(t == 0)
        def _():
            loss_acc[...] = jnp.zeros_like(loss_acc)

        gamma = gamma_ref[...]                     # (1, 128); broadcasts over sublanes

        # numerically-stable BCEWithLogits (reduction='none'), matches PyTorch
        bce = jnp.maximum(x, 0.0) - x * y + jnp.log1p(e)

        # Select base/exponent BEFORE the log/exp: 1 log + 1 exp instead of 2+2.
        # TODO(synk): for guaranteed hard {0,1} targets log(p_t) == -bce; reuse it
        #             to drop one more EUP log (invalid for soft / smoothed labels).
        log_pt = jnp.log(p_t)
        base = jnp.where(p_t > 0.5, 1.000001 - p_t, 1.5 - p_t)
        expo = jnp.where(p_t > 0.5, gamma, -log_pt)
        mod = jnp.exp(expo * jnp.log(base))

        loss = bce * mod
        contrib = loss if valid is None else jnp.where(valid, loss, 0.0)
        loss_acc[...] += contrib.reshape(-1, SUBLANES, LANES).sum(axis=0)

        @pl.when(t == tiles - 1)
        def _():
            s = jnp.sum(loss_acc[...], axis=0, keepdims=True)    # (1, 128)
            s = jnp.sum(s, axis=1, keepdims=True)                # (1, 1)
            # 'mean' reduction (BCEWithLogitsLoss default)
            out_ref[...] = jnp.broadcast_to(s * inv_total, (1, LANES))


def adaptive_threshold_focal_loss(pred, true, *, force_streaming=False):
    """pred, true: same-shape arrays (logits / targets). Returns scalar mean loss."""
    assert pred.shape == true.shape
    total = int(pred.size)
    assert total > 0
    rows = pl.cdiv(total, LANES)

    itemsize = max(jnp.dtype(pred.dtype).itemsize, jnp.dtype(true.dtype).itemsize)

    # resident single-read path: constant input block index => one HBM read total
    rows_resident = _round_up(rows, SUBLANES)
    resident_bytes = 2 * 2 * rows_resident * LANES * itemsize   # 2 tensors x 2 bufs
    resident = (not force_streaming) and resident_bytes <= RESIDENT_INPUT_VMEM_BUDGET

    if resident:
        block_rows = min(STREAM_BLOCK_ROWS, rows_resident)
        rows_padded = _round_up(rows_resident, block_rows)
    else:
        block_rows = STREAM_BLOCK_ROWS
        rows_padded = _round_up(rows, block_rows)
    tiles = rows_padded // block_rows

    padded_total = rows_padded * LANES
    needs_mask = padded_total != total

    pred_flat = pred.reshape(-1)
    true_flat = true.reshape(-1)
    if needs_mask:
        pad = padded_total - total
        pred_flat = jnp.pad(pred_flat, (0, pad))
        true_flat = jnp.pad(true_flat, (0, pad))
    pred2 = pred_flat.reshape(rows_padded, LANES)   # keep native dtype; cast in-kernel
    true2 = true_flat.reshape(rows_padded, LANES)

    kernel = functools.partial(
        _fused_atfl_kernel, tiles=tiles, block_rows=block_rows,
        total=total, needs_mask=needs_mask, resident=resident)

    if resident:
        tensor_spec = pl.BlockSpec((rows_padded, LANES), lambda ph, t: (0, 0))
    else:
        tensor_spec = pl.BlockSpec((block_rows, LANES), lambda ph, t: (t, 0))

    out = pl.pallas_call(
        kernel,
        out_shape=jax.ShapeDtypeStruct((1, LANES), jnp.float32),
        grid_spec=pltpu.PrefetchScalarGridSpec(
            num_scalar_prefetch=0,
            grid=(2, tiles),                        # (phase, tile)
            in_specs=[tensor_spec, tensor_spec],
            out_specs=pl.BlockSpec((1, LANES), lambda ph, t: (0, 0)),
            scratch_shapes=[
                pltpu.VMEM((SUBLANES, LANES), jnp.float32),   # p_t partial sums
                pltpu.VMEM((SUBLANES, LANES), jnp.float32),   # loss partial sums
                pltpu.VMEM((1, LANES), jnp.float32),          # gamma (phase0 -> phase1)
            ],
        ),
        compiler_params=pltpu.CompilerParams(
            # TODO(synk): a v7x 2-TensorCore split of the tile axis needs a
            # cross-core gamma reduce (CMEM + core_barrier); kept single-core
            # here so gamma stays a plain VMEM scratch across the two phases.
            dimension_semantics=("arbitrary", "arbitrary"),
            vmem_limit_bytes=32 * 1024 * 1024,
        ),
    )(pred2, true2)
    return out[0, 0]


def _adaptive_threshold_focal_loss_ref(pred, true):
    x = pred.astype(jnp.float32)
    y = true.astype(jnp.float32)
    bce = jnp.maximum(x, 0.0) - x * y + jnp.log1p(jnp.exp(-jnp.abs(x)))
    p = jax.nn.sigmoid(x)
    p_t = y * p + (1.0 - y) * (1.0 - p)
    mean_pt = p_t.mean()
    p_t_new = 0.05 * mean_pt + 0.95 * mean_pt
    gamma = -jnp.log(p_t_new)
    high = jnp.where(p_t > 0.5, (1.000001 - p_t) ** gamma, 0.0)
    low = jnp.where(p_t <= 0.5, (1.5 - p_t) ** (-jnp.log(p_t)), 0.0)
    return jnp.mean(bce * (high + low))


if __name__ == "__main__":
    key = jax.random.PRNGKey(0)
    k1, k2, k3, k4, k5, k6 = jax.random.split(key, 6)

    # 1) NCHW logits / targets (YOLO cls-head style): B=2, C=4, H=W=16 -> resident path
    pred = jax.random.normal(k1, (2, 4, 16, 16), dtype=jnp.float32)
    true = (jax.random.uniform(k2, (2, 4, 16, 16)) > 0.7).astype(jnp.float32)
    out = jax.block_until_ready(adaptive_threshold_focal_loss(pred, true))
    ref = _adaptive_threshold_focal_loss_ref(pred, true)
    assert jnp.allclose(out, ref, rtol=1e-4, atol=1e-6), ("resident", out, ref)

    # 2) arbitrary odd shape (not a multiple of 128) -> pad-and-mask path
    pred_o = jax.random.normal(k3, (3, 5, 7), dtype=jnp.float32)
    true_o = (jax.random.uniform(k4, (3, 5, 7)) > 0.5).astype(jnp.float32)
    out_o = jax.block_until_ready(adaptive_threshold_focal_loss(pred_o, true_o))
    ref_o = _adaptive_threshold_focal_loss_ref(pred_o, true_o)
    assert jnp.allclose(out_o, ref_o, rtol=1e-4, atol=1e-6), ("masked", out_o, ref_o)

    # 3) multi-tile streaming path (fused two-phase grid, accumulator carry)
    pred_s = jax.random.normal(k5, (2, 16, 64, 64), dtype=jnp.float32)
    true_s = (jax.random.uniform(k6, (2, 16, 64, 64)) > 0.8).astype(jnp.float32)
    out_s = jax.block_until_ready(
        adaptive_threshold_focal_loss(pred_s, true_s, force_streaming=True))
    ref_s = _adaptive_threshold_focal_loss_ref(pred_s, true_s)
    assert jnp.allclose(out_s, ref_s, rtol=1e-4, atol=1e-6), ("stream", out_s, ref_s)

    print("KERNEL_OK")
</pallas_src>

<mosaic_0001>
module attributes {stable_mosaic.version = 11 : i64} {
  func.func @_fused_atfl_kernel(%arg0: i32, %arg1: i32, %arg2: memref<16x128xf32, #tpu.memory_space<vmem>>, %arg3: memref<16x128xf32, #tpu.memory_space<vmem>>, %arg4: memref<1x128xf32, #tpu.memory_space<vmem>>, %arg5: memref<8x128xf32, #tpu.memory_space<vmem>>, %arg6: memref<8x128xf32, #tpu.memory_space<vmem>>, %arg7: memref<1x128xf32, #tpu.memory_space<vmem>>) attributes {dimension_semantics = [#tpu.dimension_semantics<arbitrary>, #tpu.dimension_semantics<arbitrary>], iteration_bounds = array<i64: 2, 1>, scalar_prefetch = 0 : i64, scratch_operands = 3 : i64, tpu.core_type = #tpu.core_type<tc>, window_params = [{pipeline_mode = #tpu.pipeline_mode<synchronous>, transform_indices = @transform_0, window_bounds = array<i64: 16, 128>}, {pipeline_mode = #tpu.pipeline_mode<synchronous>, transform_indices = @transform_1, window_bounds = array<i64: 16, 128>}, {pipeline_mode = #tpu.pipeline_mode<synchronous>, transform_indices = @transform_2, window_bounds = array<i64: 1, 128>}]} {
    %c16_i32 = arith.constant 16 : i32
    %0 = arith.muli %arg1, %c16_i32 : i32
    %1 = tpu.assume_multiple %0, 16 : i32
    %2 = arith.index_cast %1 : i32 to index
    %c0 = arith.constant 0 : index
    %3 = vector.load %arg2[%2, %c0] : memref<16x128xf32, #tpu.memory_space<vmem>>, vector<16x128xf32>
    %4 = arith.index_cast %1 : i32 to index
    %c0_0 = arith.constant 0 : index
    %5 = vector.load %arg3[%4, %c0_0] : memref<16x128xf32, #tpu.memory_space<vmem>>, vector<16x128xf32>
    %6 = math.absf %3 : vector<16x128xf32>
    %cst = arith.constant 0.000000e+00 : f32
    %7 = vector.broadcast %cst : f32 to vector<16x128xf32>
    %8 = arith.subf %7, %6 : vector<16x128xf32>
    %9 = math.exp %8 : vector<16x128xf32>
    %cst_1 = arith.constant 1.000000e+00 : f32
    %10 = vector.broadcast %cst_1 : f32 to vector<16x128xf32>
    %11 = arith.addf %10, %9 : vector<16x128xf32>
    %cst_2 = arith.constant 1.000000e+00 : f32
    %12 = vector.broadcast %cst_2 : f32 to vector<16x128xf32>
    %13 = arith.divf %12, %11 : vector<16x128xf32>
    %cst_3 = arith.constant 0.000000e+00 : f32
    %14 = vector.broadcast %cst_3 : f32 to vector<16x128xf32>
    %15 = arith.cmpf oge, %3, %14 : vector<16x128xf32>
    %16 = arith.mulf %9, %13 : vector<16x128xf32>
    %17 = arith.select %15, %13, %16 : vector<16x128xi1>, vector<16x128xf32>
    %18 = arith.mulf %5, %17 : vector<16x128xf32>
    %cst_4 = arith.constant 1.000000e+00 : f32
    %19 = vector.broadcast %cst_4 : f32 to vector<16x128xf32>
    %20 = arith.subf %19, %5 : vector<16x128xf32>
    %cst_5 = arith.constant 1.000000e+00 : f32
    %21 = vector.broadcast %cst_5 : f32 to vector<16x128xf32>
    %22 = arith.subf %21, %17 : vector<16x128xf32>
    %23 = arith.mulf %20, %22 : vector<16x128xf32>
    %24 = arith.addf %18, %23 : vector<16x128xf32>
    %c0_i32 = arith.constant 0 : i32
    %25 = arith.cmpi eq, %arg0, %c0_i32 : i32
    %26 = arith.extui %25 : i1 to i32
    %c0_i32_6 = arith.constant 0 : i32
    %27 = arith.cmpi ne, %26, %c0_i32_6 : i32
    scf.if %27 {
      %c0_i32_8 = arith.constant 0 : i32
      %31 = arith.cmpi eq, %arg1, %c0_i32_8 : i32
      %32 = arith.extui %31 : i1 to i32
      %c0_i32_9 = arith.constant 0 : i32
      %33 = arith.cmpi ne, %32, %c0_i32_9 : i32
      scf.if %33 {
        %cst_17 = arith.constant 0.000000e+00 : f32
        %42 = vector.broadcast %cst_17 : f32 to vector<8x128xf32>
        %c0_18 = arith.constant 0 : index
        %c0_19 = arith.constant 0 : index
        %43 = vector.load %arg5[%c0_18, %c0_19] : memref<8x128xf32, #tpu.memory_space<vmem>>, vector<8x128xf32>
        tpu.vector_store %arg5[%c0_18, %c0_19], %42 {strides = array<i32>} : memref<8x128xf32, #tpu.memory_space<vmem>>, vector<8x128xf32>,
      } else {
      }
      %c0_10 = arith.constant 0 : index
      %c0_11 = arith.constant 0 : index
      %34 = vector.load %arg5[%c0_10, %c0_11] : memref<8x128xf32, #tpu.memory_space<vmem>>, vector<8x128xf32>
      %35 = vector.shape_cast %24 : vector<16x128xf32> to vector<2x8x128xf32>
      %cst_12 = arith.constant dense<0.000000e+00> : vector<8x128xf32>
      %36 = vector.multi_reduction <add>, %35, %cst_12 [0] : vector<2x8x128xf32> to vector<8x128xf32>
      %37 = arith.addf %34, %36 : vector<8x128xf32>
      %c0_13 = arith.constant 0 : index
      %c0_14 = arith.constant 0 : index
      %38 = vector.load %arg5[%c0_13, %c0_14] : memref<8x128xf32, #tpu.memory_space<vmem>>, vector<8x128xf32>
      tpu.vector_store %arg5[%c0_13, %c0_14], %37 {strides = array<i32>} : memref<8x128xf32, #tpu.memory_space<vmem>>, vector<8x128xf32>,
      %c0_i32_15 = arith.constant 0 : i32
      %39 = arith.cmpi eq, %arg1, %c0_i32_15 : i32
      %40 = arith.extui %39 : i1 to i32
      %c0_i32_16 = arith.constant 0 : i32
      %41 = arith.cmpi ne, %40, %c0_i32_16 : i32
      scf.if %41 {
        %c0_17 = arith.constant 0 : index
        %c0_18 = arith.constant 0 : index
        %42 = vector.load %arg5[%c0_17, %c0_18] : memref<8x128xf32, #tpu.memory_space<vmem>>, vector<8x128xf32>
        %cst_19 = arith.constant dense<0.000000e+00> : vector<128xf32>
        %43 = vector.multi_reduction <add>, %42, %cst_19 [0] : vector<8x128xf32> to vector<128xf32>
        %44 = vector.shape_cast %43 : vector<128xf32> to vector<1x128xf32>
        %cst_20 = arith.constant dense<0.000000e+00> : vector<1xf32>
        %45 = vector.multi_reduction <add>, %44, %cst_20 [1] : vector<1x128xf32> to vector<1xf32>
        %46 = vector.shape_cast %45 : vector<1xf32> to vector<1x1xf32>
        %cst_21 = arith.constant 4.8828125E-4 : f32
        %47 = vector.broadcast %cst_21 : f32 to vector<1x1xf32>
        %48 = arith.mulf %46, %47 : vector<1x1xf32>
        %cst_22 = arith.constant 5.000000e-02 : f32
        %49 = vector.broadcast %cst_22 : f32 to vector<1x1xf32>
        %50 = arith.mulf %49, %48 : vector<1x1xf32>
        %cst_23 = arith.constant 0.949999988 : f32
        %51 = vector.broadcast %cst_23 : f32 to vector<1x1xf32>
        %52 = arith.mulf %51, %48 : vector<1x1xf32>
        %53 = arith.addf %50, %52 : vector<1x1xf32>
        %54 = math.log %53 : vector<1x1xf32>
        %cst_24 = arith.constant 0.000000e+00 : f32
        %55 = vector.broadcast %cst_24 : f32 to vector<1x1xf32>
        %56 = arith.subf %55, %54 : vector<1x1xf32>
        %57 = vector.shape_cast %56 : vector<1x1xf32> to vector<1x1xf32>
        %58 = vector.broadcast %57 : vector<1x1xf32> to vector<1x128xf32>
        %c0_25 = arith.constant 0 : index
        %c0_26 = arith.constant 0 : index
        %59 = vector.load %arg7[%c0_25, %c0_26] : memref<1x128xf32, #tpu.memory_space<vmem>>, vector<1x128xf32>
        tpu.vector_store %arg7[%c0_25, %c0_26], %58 {strides = array<i32>} : memref<1x128xf32, #tpu.memory_space<vmem>>, vector<1x128xf32>,
      } else {
      }
    } else {
    }
    %c1_i32 = arith.constant 1 : i32
    %28 = arith.cmpi eq, %arg0, %c1_i32 : i32
    %29 = arith.extui %28 : i1 to i32
    %c0_i32_7 = arith.constant 0 : i32
    %30 = arith.cmpi ne, %29, %c0_i32_7 : i32
    scf.if %30 {
      %c0_i32_8 = arith.constant 0 : i32
      %31 = arith.cmpi eq, %arg1, %c0_i32_8 : i32
      %32 = arith.extui %31 : i1 to i32
      %c0_i32_9 = arith.constant 0 : i32
      %33 = arith.cmpi ne, %32, %c0_i32_9 : i32
      scf.if %33 {
        %cst_25 = arith.constant 0.000000e+00 : f32
        %68 = vector.broadcast %cst_25 : f32 to vector<8x128xf32>
        %c0_26 = arith.constant 0 : index
        %c0_27 = arith.constant 0 : index
        %69 = vector.load %arg6[%c0_26, %c0_27] : memref<8x128xf32, #tpu.memory_space<vmem>>, vector<8x128xf32>
        tpu.vector_store %arg6[%c0_26, %c0_27], %68 {strides = array<i32>} : memref<8x128xf32, #tpu.memory_space<vmem>>, vector<8x128xf32>,
      } else {
      }
      %c0_10 = arith.constant 0 : index
      %c0_11 = arith.constant 0 : index
      %34 = vector.load %arg7[%c0_10, %c0_11] : memref<1x128xf32, #tpu.memory_space<vmem>>, vector<1x128xf32>
      %cst_12 = arith.constant 0.000000e+00 : f32
      %35 = vector.broadcast %cst_12 : f32 to vector<16x128xf32>
      %36 = arith.maximumf %3, %35 : vector<16x128xf32>
      %37 = arith.mulf %3, %5 : vector<16x128xf32>
      %38 = arith.subf %36, %37 : vector<16x128xf32>
      %39 = math.log1p %9 : vector<16x128xf32>
      %40 = arith.addf %38, %39 : vector<16x128xf32>
      %41 = math.log %24 : vector<16x128xf32>
      %cst_13 = arith.constant 5.000000e-01 : f32
      %42 = vector.broadcast %cst_13 : f32 to vector<16x128xf32>
      %43 = arith.cmpf ogt, %24, %42 : vector<16x128xf32>
      %cst_14 = arith.constant 1.00000095 : f32
      %44 = vector.broadcast %cst_14 : f32 to vector<16x128xf32>
      %45 = arith.subf %44, %24 : vector<16x128xf32>
      %cst_15 = arith.constant 1.500000e+00 : f32
      %46 = vector.broadcast %cst_15 : f32 to vector<16x128xf32>
      %47 = arith.subf %46, %24 : vector<16x128xf32>
      %48 = arith.select %43, %45, %47 : vector<16x128xi1>, vector<16x128xf32>
      %cst_16 = arith.constant 5.000000e-01 : f32
      %49 = vector.broadcast %cst_16 : f32 to vector<16x128xf32>
      %50 = arith.cmpf ogt, %24, %49 : vector<16x128xf32>
      %cst_17 = arith.constant 0.000000e+00 : f32
      %51 = vector.broadcast %cst_17 : f32 to vector<16x128xf32>
      %52 = arith.subf %51, %41 : vector<16x128xf32>
      %53 = vector.shape_cast %34 : vector<1x128xf32> to vector<1x128xf32>
      %54 = vector.broadcast %53 : vector<1x128xf32> to vector<16x128xf32>
      %55 = arith.select %50, %54, %52 : vector<16x128xi1>, vector<16x128xf32>
      %56 = math.log %48 : vector<16x128xf32>
      %57 = arith.mulf %55, %56 : vector<16x128xf32>
      %58 = math.exp %57 : vector<16x128xf32>
      %59 = arith.mulf %40, %58 : vector<16x128xf32>
      %c0_18 = arith.constant 0 : index
      %c0_19 = arith.constant 0 : index
      %60 = vector.load %arg6[%c0_18, %c0_19] : memref<8x128xf32, #tpu.memory_space<vmem>>, vector<8x128xf32>
      %61 = vector.shape_cast %59 : vector<16x128xf32> to vector<2x8x128xf32>
      %cst_20 = arith.constant dense<0.000000e+00> : vector<8x128xf32>
      %62 = vector.multi_reduction <add>, %61, %cst_20 [0] : vector<2x8x128xf32> to vector<8x128xf32>
      %63 = arith.addf %60, %62 : vector<8x128xf32>
      %c0_21 = arith.constant 0 : index
      %c0_22 = arith.constant 0 : index
      %64 = vector.load %arg6[%c0_21, %c0_22] : memref<8x128xf32, #tpu.memory_space<vmem>>, vector<8x128xf32>
      tpu.vector_store %arg6[%c0_21, %c0_22], %63 {strides = array<i32>} : memref<8x128xf32, #tpu.memory_space<vmem>>, vector<8x128xf32>,
      %c0_i32_23 = arith.constant 0 : i32
      %65 = arith.cmpi eq, %arg1, %c0_i32_23 : i32
      %66 = arith.extui %65 : i1 to i32
      %c0_i32_24 = arith.constant 0 : i32
      %67 = arith.cmpi ne, %66, %c0_i32_24 : i32
      scf.if %67 {
        %c0_25 = arith.constant 0 : index
        %c0_26 = arith.constant 0 : index
        %68 = vector.load %arg6[%c0_25, %c0_26] : memref<8x128xf32, #tpu.memory_space<vmem>>, vector<8x128xf32>
        %cst_27 = arith.constant dense<0.000000e+00> : vector<128xf32>
        %69 = vector.multi_reduction <add>, %68, %cst_27 [0] : vector<8x128xf32> to vector<128xf32>
        %70 = vector.shape_cast %69 : vector<128xf32> to vector<1x128xf32>
        %cst_28 = arith.constant dense<0.000000e+00> : vector<1xf32>
        %71 = vector.multi_reduction <add>, %70, %cst_28 [1] : vector<1x128xf32> to vector<1xf32>
        %72 = vector.shape_cast %71 : vector<1xf32> to vector<1x1xf32>
        %cst_29 = arith.constant 4.8828125E-4 : f32
        %73 = vector.broadcast %cst_29 : f32 to vector<1x1xf32>
        %74 = arith.mulf %72, %73 : vector<1x1xf32>
        %75 = vector.shape_cast %74 : vector<1x1xf32> to vector<1x1xf32>
        %76 = vector.broadcast %75 : vector<1x1xf32> to vector<1x128xf32>
        %c0_30 = arith.constant 0 : index
        %c0_31 = arith.constant 0 : index
        %77 = vector.load %arg4[%c0_30, %c0_31] : memref<1x128xf32, #tpu.memory_space<vmem>>, vector<1x128xf32>
        tpu.vector_store %arg4[%c0_30, %c0_31], %76 {strides = array<i32>} : memref<1x128xf32, #tpu.memory_space<vmem>>, vector<1x128xf32>,
      } else {
      }
    } else {
    }
    return
  }
  func.func @transform_0(%arg0: i32, %arg1: i32) -> (i32, i32) {
    %c0_i32 = arith.constant 0 : i32
    %c0_i32_0 = arith.constant 0 : i32
    %c0_i32_1 = arith.constant 0 : i32
    return %c0_i32, %c0_i32_0 : i32, i32
  }
  func.func @transform_1(%arg0: i32, %arg1: i32) -> (i32, i32) {
    %c0_i32 = arith.constant 0 : i32
    %c0_i32_0 = arith.constant 0 : i32
    %c0_i32_1 = arith.constant 0 : i32
    return %c0_i32, %c0_i32_0 : i32, i32
  }
  func.func @transform_2(%arg0: i32, %arg1: i32) -> (i32, i32) {
    %c0_i32 = arith.constant 0 : i32
    %c0_i32_0 = arith.constant 0 : i32
    %c0_i32_1 = arith.constant 0 : i32
    return %c0_i32, %c0_i32_0 : i32, i32
  }
}

</mosaic_0001>

<bundles_post_ra>
// kernel: tpu_custom_call.1
= control target key start
LH: loop header
LB: loop body
LE: loop exit
PB: predicated region body
PF: predicated region fallthrough
CT: control target
= control target key end

     0   :  { %7 = vsyncpa [#allocation6], 0  ;;  %s769_s0 = inlined_call_operand.hbm [shape: f32[16,128], index: 0, kind: input, shape index: {}]   ;;  %s770_s1 = inlined_call_operand.hbm [shape: f32[16,128], index: 1, kind: input, shape index: {}]   ;;  %s771_s2 = inlined_call_operand.hbm [shape: f32[1,128], index: 2, kind: output, shape index: {}]  }
   0x1   :  { %8 = vsyncpa [#allocation9], 0 }
   0x2   :  { %9 = vsyncpa [#allocation7], 0  ;;  %s646_s9 = smov 0   ;;  %s648_s10 = smov 0  }
   0x3   :  { %s650_s11 = smov 0  }
   0x4 LB: > { %s408_s12 = sadd.s32 4294967295, %s624_s11   ;;  %s27_s13 = sadd.s32 1, %s620_s10  ;;  %s624_s11 = sphi %s650_s11, %s15_s11   ;;  %s620_s10 = sphi %s648_s10, %s775_s10   ;;  %s616_s9 = sphi %s646_s9, %s774_s9  }
   0x5   : > { %p29_p0 = scmp.ge.s32.totalorder %s27_s13, 2  ;;  %p409_p1 = scmp.ge.s32.totalorder %s624_s11, 1 }
   0x6   : > { %p95_p2 = scmp.lt.s32.totalorder %s624_s11, 3  ;;  %p673_p4 = scmp.eq.s32.totalorder %s408_s12, 0 }
   0x7   : > { %s777_s13 = smov (%p29_p0, %s27_s13), 0  ;;  %s106_s18 = sshll.u32 %s769_s0, 4  ;;  %s107_s18 = int_to_ptr.hbm [resolvable:$true] %s106_s18 }
   0x8   : > { %p667_p3 = pnand %p409_p1, %p95_p2  ;;  %s626_s19 = smov [#allocation5]  }
   0x9   : > { %s108_s20 = sshll.u32 %s626_s19, 4  ;;  %s120_s23 = sshll.u32 %s770_s1, 4  ;;  %s109_s20 = int_to_ptr.vmem [resolvable:$true] %s108_s20  ;;  %s121_s23 = int_to_ptr.hbm [resolvable:$true] %s120_s23 }
   0xa   : > { %p433_p5 = pneg %p667_p3  ;;  %s627_s24 = smov 128  }
   0xb   : > { %s628_s25 = smov 8   ;;  %s629_s26 = smov [#allocation8]  }
   0xc   : > { %p434_p6 = pnand %p673_p4, %p433_p5  ;;  %s122_s27 = sshll.u32 %s629_s26, 4  ;;  %s123_s27 = int_to_ptr.vmem [resolvable:$true] %s122_s27 }
   0xd   : > { %138 = sbr.rel (%p667_p3) target bundleno = 385 (0x181), region = 28 }
   0xe   : > { %436 = dma.hbm_to_vmem [thread:$0]  (!%p434_p6), %s107_s18, 256, %s109_s20, [#allocation6], %s627_s24, %s627_s24, %s628_s25  }
   0xf   : > { %439 = dma.hbm_to_vmem [thread:$0]  (!%p434_p6), %s121_s23, 256, %s123_s27, [#allocation9], %s627_s24, %s627_s24, %s628_s25  }
  0x12   : > { %603 = dma.done.wait (%p673_p4), [#allocation6], 256  }
  0x13   : > { %605 = vsyncadd (%p673_p4), [#allocation6], 4294967040 }
  0x14   : > { %607 = dma.done.wait (%p673_p4), [#allocation9], 256  }
  0x15   : > { %609 = vsyncadd (%p673_p4), [#allocation9], 4294967040  ;;  %v697_v0 = vld [vmem:[#allocation5] sm:$0xff]  ;;  %v699_v1 = vld [vmem:[#allocation5 + $0x8] sm:$0xff]  ;;  %p415_p7 = scmp.ne.s32.totalorder %s616_s9, 0 }
  0x16   : > { %v163_v2 = vand.u32 2147483647, %v697_v0  ;;  %v164_v3 = vand.u32 2147483647, %v699_v1  ;;  %v723_v28 = vld [vmem:[#allocation8] sm:$0xff]  ;;  %v725_v30 = vld [vmem:[#allocation8 + $0x8] sm:$0xff] }
  0x17   : > { %vm203_vm8 = vcmp.ge.f32.partialorder %v697_v0, 0.0  ;;  %vm204_vm9 = vcmp.ge.f32.partialorder %v699_v1, 0.0  ;;  %v211_v36 = vsub.f32 1.0, %v723_v28  ;;  %v212_v38 = vsub.f32 1.0, %v725_v30 }
  0x18   : > { %v165_v4 = vsub.f32 0.0, %v163_v2  ;;  %v166_v5 = vsub.f32 0.0, %v164_v3 }
  0x1a   : > { %v167_v6 = vmul.f32 1.442695, %v165_v4  ;;  %v169_v7 = vmul.f32 1.442695, %v166_v5 }
  0x1c   : > { %475 = vpow2.f32 %v167_v6 }
  0x1d   : > { %477 = vpow2.f32 %v169_v7 }
  0x22   : > { %v703_v8 = vpop.eup %475 }
  0x23   : > { %v705_v9 = vpop.eup %477  ;;  %v708_v10 = vadd.f32 1.0, %v703_v8 }
  0x24   : > { %v711_v11 = vadd.f32 1.0, %v705_v9 }
  0x25   : > { %479 = vrcp.f32 %v708_v10  ;;  %vm178_vm0 = vweird.f32 %v708_v10  ;;  %v184_v15 = vand.u32 2147483648, %v708_v10  ;;  %v182_v18 = vand.u32 2147483647, %v708_v10 }
  0x26   : > { %481 = vrcp.f32 %v711_v11  ;;  %v199_v19 = vand.u32 2147483648, %v711_v11  ;;  %vm193_vm2 = vweird.f32 %v711_v11  ;;  %v197_v21 = vand.u32 2147483647, %v711_v11 }
  0x27   : > { %v185_v23 = vor.u32 1.1754944e-38, %v184_v15  ;;  %vm183_vm5 = vcmp.eq.f32.partialorder %v182_v18, 8.507059e+37 }
  0x28   : > { %v200_v26 = vor.u32 1.1754944e-38, %v199_v19  ;;  %vm198_vm7 = vcmp.eq.f32.partialorder %v197_v21, 8.507059e+37 }
  0x2b   : > { %v480_v12 = vpop.eup %479 }
  0x2c   : > { %v482_v13 = vpop.eup %481  ;;  %v174_v14 = vmul.f32 %v480_v12, %v708_v10  ;;  %vm179_vm1 = vweird.f32 %v480_v12 }
  0x2d   : > { %v189_v16 = vmul.f32 %v482_v13, %v711_v11  ;;  %vm194_vm3 = vweird.f32 %v482_v13  ;;  %vm180_vm4 = vmor %vm178_vm0, %vm179_vm1 }
  0x2e   : > { %v175_v17 = vsub.f32 1.0, %v174_v14  ;;  %vm195_vm6 = vmor %vm193_vm2, %vm194_vm3 }
  0x2f   : > { %v190_v20 = vsub.f32 1.0, %v189_v16 }
  0x30   : > { %v176_v22 = vmul.f32 %v480_v12, %v175_v17 }
  0x31   : > { %v191_v24 = vmul.f32 %v482_v13, %v190_v20 }
  0x32   : > { %v177_v25 = vadd.f32 %v480_v12, %v176_v22 }
  0x33   : > { %v192_v27 = vadd.f32 %v482_v13, %v191_v24 }
  0x34   : > { %v181_v29 = vsel %vm180_vm4, %v480_v12, %v177_v25 }
  0x35   : > { %v186_v31 = vsel %vm183_vm5, %v185_v23, %v181_v29  ;;  %v196_v32 = vsel %vm195_vm6, %v482_v13, %v192_v27 }
  0x36   : > { %v201_v33 = vsel %vm198_vm7, %v200_v26, %v196_v32  ;;  %v205_v34 = vmul.f32 %v703_v8, %v186_v31 }
  0x37   : > { %v206_v35 = vmul.f32 %v705_v9, %v201_v33 }
  0x38   : > { %v207_v37 = vsel %vm203_vm8, %v186_v31, %v205_v34 }
  0x39   : > { %v208_v39 = vsel %vm204_vm9, %v201_v33, %v206_v35  ;;  %v209_v40 = vmul.f32 %v207_v37, %v723_v28  ;;  %v213_v41 = vsub.f32 1.0, %v207_v37 }
  0x3a   : > { %v210_v42 = vmul.f32 %v208_v39, %v725_v30  ;;  %v214_v43 = vsub.f32 1.0, %v208_v39  ;;  %222 = sbr.rel (%p415_p7) target bundleno = 212 (0xd4), region = 40 }
  0x3b   : > { %v215_v44 = vmul.f32 %v213_v41, %v211_v36 }
  0x3c   : > { %v216_v45 = vmul.f32 %v214_v43, %v212_v38 }
  0x3d   : > { %v217_v46 = vadd.f32 %v215_v44, %v209_v40 }
  0x3e   : > { %v218_v47 = vadd.f32 %v216_v45, %v210_v42 }
  0x40   : > { %v229_v48 = vadd.f32 %v218_v47, %v217_v46 }
  0x42   : > { %v236_v49 = vrot.slane %v229_v48, 4 }
  0x44   : > { %v237_v50 = vadd.f32 %v236_v49, %v229_v48 }
  0x46   : > { %v238_v51 = vrot.slane %v237_v50, 2 }
  0x48   : > { %v239_v52 = vadd.f32 %v238_v51, %v237_v50 }
  0x4a   : > { %v240_v53 = vrot.slane %v239_v52, 1 }
  0x4c   : > { %v241_v54 = vadd.f32 %v240_v53, %v239_v52 }
  0x4e   : > { %242 = vadd.xlane.f32.xlu0 %v241_v54 }
  0xc1   : > { %v243_v55 = vpop.xlane.xlu0 %242 }
  0xc2   : > { %v244_v56 = vmul.f32 0.00048828125, %v243_v55 }
  0xc4   : > { %v245_v57 = vmul.f32 0.05, %v244_v56  ;;  %v246_v58 = vmul.f32 0.95, %v244_v56 }
  0xc6   : > { %v247_v59 = vadd.f32 %v246_v58, %v245_v57 }
  0xc8   : > { %483 = vlog2.f32 %v247_v59 }
  0xce   : > { %v484_v60 = vpop.eup %483 }
  0xcf   : > { %v249_v61 = vmul.f32 0.6931472, %v484_v60 }
  0xd1   : > { %v250_v62 = vsub.f32 0.0, %v249_v61 }
  0xd3   : > { %251 = vst [vmem:[#allocation4] sm:$0x1] %v250_v62 }
  0xd4 PF: > { %p416_p8 = scmp.ne.s32.totalorder %s616_s9, 1 }
  0xd6   : > { %255 = sbr.rel (%p416_p8) target bundleno = 379 (0x17b), region = 52 }
  0xdb   : > { %486 = vlog2.f32 %v217_v46  ;;  %vm292_vm10 = vcmp.gt.f32.partialorder %v217_v46, 0.5  ;;  %vm293_vm11 = vcmp.gt.f32.partialorder %v218_v47, 0.5  ;;  %v294_v63 = vsub.f32 1.000001, %v217_v46  ;;  %v485_v17 = vld [vmem:[#allocation4] ss:$0 sm:$0xff] }
  0xdc   : > { %488 = vlog2.f32 %v218_v47  ;;  %v295_v2 = vsub.f32 1.000001, %v218_v47  ;;  %v296_v3 = vsub.f32 1.5, %v217_v46  ;;  %v297_v4 = vsub.f32 1.5, %v218_v47 }
  0xdd   : > { %490 = vlog2.f32 %v708_v10  ;;  %v271_v13 = vmul.f32 -0.5, %v703_v8  ;;  %v280_v15 = vmul.f32 -0.5, %v705_v9  ;;  %v274_v22 = vand.u32 2147483647, %v703_v8 }
  0xde   : > { %492 = vlog2.f32 %v711_v11  ;;  %v298_v5 = vsel %vm292_vm10, %v294_v63, %v296_v3  ;;  %v299_v6 = vsel %vm293_vm11, %v295_v2, %v297_v4  ;;  %v283_v26 = vand.u32 2147483647, %v705_v9 }
  0xdf   : > { %494 = vlog2.f32 %v298_v5  ;;  %v272_v11 = vadd.f32 1.0, %v271_v13  ;;  %v281_v23 = vadd.f32 1.0, %v280_v15  ;;  %v262_v31 = vmax.f32 %v697_v0, 0.0 }
  0xe0   : > { %496 = vlog2.f32 %v299_v6  ;;  %v263_v32 = vmax.f32 %v699_v1, 0.0  ;;  %v264_v33 = vmul.f32 %v723_v28, %v697_v0  ;;  %v265_v35 = vmul.f32 %v725_v30, %v699_v1 }
  0xe1   : > { %v487_v7 = vpop.eup %486  ;;  %v273_v37 = vmul.f32 %v703_v8, %v272_v11  ;;  %vm275_vm12 = vcmp.lt.f32.partialorder %v274_v22, 0.0004427343  ;;  %v282_v40 = vmul.f32 %v705_v9, %v281_v23  ;;  %vm284_vm13 = vcmp.lt.f32.partialorder %v283_v26, 0.0004427343 }
  0xe2   : > { %v489_v12 = vpop.eup %488  ;;  %v289_v14 = vmul.f32 0.6931472, %v487_v7  ;;  %v266_v43 = vsub.f32 %v262_v31, %v264_v33  ;;  %v267_v45 = vsub.f32 %v263_v32, %v265_v35 }
  0xe3   : > { %v291_v16 = vmul.f32 0.6931472, %v489_v12  ;;  %v491_v19 = vpop.eup %490 }
  0xe4   : > { %v300_v18 = vsub.f32 0.0, %v289_v14  ;;  %v493_v20 = vpop.eup %492  ;;  %v270_v36 = vmul.f32 0.6931472, %v491_v19 }
  0xe5   : > { %v301_v10 = vsub.f32 0.0, %v291_v16  ;;  %v495_v21 = vpop.eup %494  ;;  %v279_v39 = vmul.f32 0.6931472, %v493_v20 }
  0xe6   : > { %v305_v24 = vsel %vm292_vm10, %v485_v17, %v300_v18  ;;  %v497_v25 = vpop.eup %496  ;;  %v308_v29 = vmul.f32 0.6931472, %v495_v21  ;;  %v276_v46 = vsel %vm275_vm12, %v273_v37, %v270_v36 }
  0xe7   : > { %v306_v27 = vsel %vm293_vm11, %v485_v17, %v301_v10  ;;  %v310_v34 = vmul.f32 0.6931472, %v497_v25  ;;  %v285_v0 = vsel %vm284_vm13, %v282_v40, %v279_v39  ;;  %v286_v28 = vadd.f32 %v276_v46, %v266_v43 }
  0xe8   : > { %v311_v38 = vmul.f32 %v308_v29, %v305_v24  ;;  %v287_v1 = vadd.f32 %v285_v0, %v267_v45 }
  0xe9   : > { %v312_v41 = vmul.f32 %v310_v34, %v306_v27 }
  0xea   : > { %v313_v42 = vmul.f32 1.442695, %v311_v38 }
  0xeb   : > { %v315_v44 = vmul.f32 1.442695, %v312_v41 }
  0xec   : > { %498 = vpow2.f32 %v313_v42 }
  0xed   : > { %500 = vpow2.f32 %v315_v44 }
  0xf2   : > { %v499_v30 = vpop.eup %498 }
  0xf3   : > { %v501_v47 = vpop.eup %500  ;;  %v317_v8 = vmul.f32 %v499_v30, %v286_v28 }
  0xf4   : > { %v318_v48 = vmul.f32 %v501_v47, %v287_v1 }
  0xf6   : > { %v320_v49 = vadd.f32 %v318_v48, %v317_v8 }
  0xf8   : > { %v327_v50 = vrot.slane %v320_v49, 4 }
  0xfa   : > { %v328_v51 = vadd.f32 %v327_v50, %v320_v49 }
  0xfc   : > { %v329_v9 = vrot.slane %v328_v51, 2 }
  0xfe   : > { %v330_v52 = vadd.f32 %v329_v9, %v328_v51 }
 0x100   : > { %v331_v53 = vrot.slane %v330_v52, 1 }
 0x102   : > { %v332_v54 = vadd.f32 %v331_v53, %v330_v52 }
 0x104   : > { %333 = vadd.xlane.f32.xlu0 %v332_v54 }
 0x177   : > { %v334_v55 = vpop.xlane.xlu0 %333 }
 0x178   : > { %v335_v56 = vmul.f32 0.00048828125, %v334_v55 }
 0x17a   : > { %336 = vst [vmem:[#allocation10] sm:$0x1] %v335_v56 }
 0x17b PF: > { %p444_p9 = scmp.eq.s32.totalorder %s408_s12, 1  ;;  %s345_s30 = sshll.u32 %s771_s2, 4  ;;  %s346_s30 = int_to_ptr.hbm [resolvable:$true] %s345_s30 }
 0x17c   : > { %s630_s3 = smov [#allocation10]  }
 0x17d   : > { %s343_s4 = sshll.u32 %s630_s3, 4  ;;  %s344_s4 = int_to_ptr.vmem [resolvable:$true] %s343_s4 }
 0x17e   : > { %430 = dma.vmem_to_hbm [thread:$0]  (%p444_p9), %s344_s4, 16, %s346_s30, [#allocation7]  }
 0x17f   : > { %611 = dma.done.wait (%p444_p9), [#allocation7], 16  }
 0x180   : > { %613 = vsyncadd (%p444_p9), [#allocation7], 4294967280 }
 0x181 PF: > { %s15_s11 = sadd.s32 1, %s624_s11   ;;  %s774_s9 = smov %s620_s10 }
 0x182   : > { %p12_p10 = scmp.ge.s32.totalorder %s15_s11, 4   ;;  %s775_s10 = smov %s777_s13 }
 0x184   :  { %14 = sbr.rel (!%p12_p10) target bundleno = 4 (0x4), region = 87 }
 0x189   :  { %359 = vsyncpa [#allocation6], 1 }
 0x18a   :  { %361 = vsyncpa [#allocation6 + $0x1], 1 }
 0x18b   :  { %362 = vsyncpa [#allocation9], 1 }
 0x18c   :  { %363 = vsyncpa [#allocation7], 1 }
 0x18d   :  { %365 = vsyncpa [#allocation7 + $0x1], 1 }

</bundles_post_ra>
